<compile_context>
chip_gen: v6e
topology: v6e:2x2x1
jax: 0.10.0
libtpu: 0.0.40
codegen_flags: <defaults>
</compile_context>

<pallas_src>
from functools import partial

import numpy as np
import jax
import jax.numpy as jnp
from jax import lax
from jax.experimental import pallas as pl
from jax.experimental.pallas import tpu as pltpu

SELU_ALPHA = 1.6732632423543772
SELU_SCALE = 1.0507009873554805
LV_MIN, LV_MAX = -17.0, 10.0


def _selu(z):
    # exp(min(z,0)) avoids transient inf on the (discarded) positive branch.
    neg = SELU_ALPHA * (jnp.exp(jnp.minimum(z, 0.0)) - 1.0)
    return SELU_SCALE * jnp.where(z > 0, z, neg)


# ----------------------------- fused Pallas kernel ---------------------------

def _make_kernel(O, Pw, chunk):
    """Per-sample fused forward body (one grid step == one batch element)."""

    def kernel(x_ref, w1_ref, b1_ref, w2_ref, b2_ref, wh_ref, bh_ref,
               eps_ref, out_ref):
        # ---- conv1: ONE K-fused matmul over the pre-built im2col slab.
        #      Rows are laid out as 4 chunks of `chunk` rows = the four
        #      MaxPool2d(2) phases.
        h1 = jnp.dot(x_ref[...], w1_ref[...],
                     preferred_element_type=jnp.float32)          # (4*chunk, 128)
        h1 = _selu(h1 + b1_ref[...])

        # ---- MaxPool2d(2) #1: elementwise max of the four aligned chunks.
        p0 = h1[0 * chunk:1 * chunk]
        p1 = h1[1 * chunk:2 * chunk]
        p2 = h1[2 * chunk:3 * chunk]
        p3 = h1[3 * chunk:4 * chunk]
        pooled = jnp.maximum(jnp.maximum(p0, p1), jnp.maximum(p2, p3))
        pooled = pooled.astype(jnp.bfloat16)                      # (chunk, 128)

        # ---- conv2, K-fused: the 4 output positions read by the final 2x2
        #      max-pool are stacked along sublanes, the 9 taps along lanes.
        slabs = []
        for ky in range(3):
            for kx in range(3):
                base = ky * Pw + kx
                top = pooled[base:base + 2]            # (oy=0, ox=0/1)
                bot = pooled[base + Pw:base + Pw + 2]  # (oy=1, ox=0/1)
                slabs.append(jnp.concatenate([top, bot], axis=0))
        lhs2 = jnp.concatenate(slabs, axis=1)                      # (4, 9*128)
        h2 = jnp.dot(lhs2, w2_ref[...],
                     preferred_element_type=jnp.float32)           # (4, C2)
        h2 = _selu(h2 + b2_ref[...])

        # ---- MaxPool2d(2) #2 -> 1x1 spatial; q = flattened features (1, C2).
        q = jnp.maximum(jnp.maximum(h2[0:1], h2[1:2]),
                        jnp.maximum(h2[2:3], h2[3:4]))

        # ---- fused linear heads + clamp/exp + reparameterized sample.
        head = jnp.dot(q, wh_ref[...],
                       preferred_element_type=jnp.float32) + bh_ref[...]
        q_m = head[:, :O]
        lv = jnp.clip(head[:, O:], LV_MIN, LV_MAX)
        s = jnp.exp(0.5 * lv)            # scale = sqrt(q_v); single EUP exp
        q_v = s * s
        latent = q_m + s * eps_ref[...]

        # Single lane-dense packed store (split in the wrapper).
        out_ref[...] = jnp.concatenate([q_m, q_v, latent], axis=1)

    return kernel


def _conv1_patch_indices(Ph, Pw, chunk):
    """Static (numpy) gather indices for the wrapper-side conv1 im2col.

    Row layout: 4 chunks (the four MaxPool2d(2) phases dy,dx in {0,1}^2),
    each chunk holds Ph*Pw rows (r = ph*Pw + pw), padded to `chunk`.
    """
    rows = []
    for dy in range(2):
        for dx in range(2):
            idx = [(2 * ph + dy, 2 * pw + dx)
                   for ph in range(Ph) for pw in range(Pw)]
            idx += [idx[-1]] * (chunk - len(idx))      # harmless pad rows
            rows += idx
    oh = np.array([r[0] for r in rows])                # (4*chunk,)
    ow = np.array([r[1] for r in rows])
    ky, kx = np.meshgrid(np.arange(3), np.arange(3), indexing="ij")
    hh = oh[:, None] + ky.reshape(-1)[None, :]         # (4*chunk, 9)
    ww = ow[:, None] + kx.reshape(-1)[None, :]
    return hh, ww


def _forward(x, params, eps):
    """encoder_B5 forward (eval mode, n_samples=1, squeeze=True, reparam=True)."""
    w1, b1, w2, b2, wm, bm, wv, bv = params
    N, Cin, H, W = x.shape
    C1 = w1.shape[0]          # 128
    C2 = w2.shape[0]          # n_hidden
    O = wm.shape[0]           # n_output

    Ho1, Wo1 = H - 2, W - 2               # conv1 valid output
    Ph, Pw = Ho1 // 2, Wo1 // 2           # after MaxPool2d(2)
    Ho2, Wo2 = Ph - 2, Pw - 2             # conv2 valid output
    # Final MaxPool2d(2) must collapse to 1x1 so q.view(N,-1) == (N, C2).
    assert Ho2 // 2 == 1 and Wo2 // 2 == 1, "encoder_B5 expects the p=13 pipeline"

    chunk = ((Ph * Pw + 7) // 8) * 8      # 8-aligned rows per pool phase
    R = 4 * chunk                         # conv1 LHS rows per sample
    K1 = 9 * Cin
    K2 = 9 * C1

    # ---- one-time layout prep (tiny): im2col for conv1, channels-last weights.
    hh, ww = _conv1_patch_indices(Ph, Pw, chunk)
    x_nhwc = jnp.transpose(x, (0, 2, 3, 1))                             # (N,H,W,Cin)
    x_col = x_nhwc[:, hh, ww, :].reshape(N, R, K1).astype(jnp.bfloat16)  # (N,R,9*Cin)
    w1k = jnp.transpose(w1, (2, 3, 1, 0)).reshape(K1, C1).astype(jnp.bfloat16)
    w2k = jnp.transpose(w2, (2, 3, 1, 0)).reshape(K2, C2).astype(jnp.bfloat16)
    b1r = b1.reshape(1, C1).astype(jnp.float32)
    b2r = b2.reshape(1, C2).astype(jnp.float32)
    wh = jnp.concatenate([wm.T, wv.T], axis=1).astype(jnp.float32)       # (C2, 2*O)
    bh = jnp.concatenate([bm, bv]).reshape(1, 2 * O).astype(jnp.float32)
    eps3 = eps.reshape(N, 1, O).astype(jnp.float32)

    kernel = _make_kernel(O, Pw, chunk)

    out = pl.pallas_call(
        kernel,
        out_shape=jax.ShapeDtypeStruct((N, 1, 3 * O), jnp.float32),
        grid=(N,),
        in_specs=[
            pl.BlockSpec((None, R, K1), lambda n: (n, 0, 0)),   # per-n patches
            pl.BlockSpec((K1, C1), lambda n: (0, 0)),           # w1 (resident)
            pl.BlockSpec((1, C1), lambda n: (0, 0)),            # b1
            pl.BlockSpec((K2, C2), lambda n: (0, 0)),           # w2 (resident)
            pl.BlockSpec((1, C2), lambda n: (0, 0)),            # b2
            pl.BlockSpec((C2, 2 * O), lambda n: (0, 0)),        # fused head W
            pl.BlockSpec((1, 2 * O), lambda n: (0, 0)),         # fused head b
            pl.BlockSpec((None, 1, O), lambda n: (n, 0, 0)),    # per-n eps
        ],
        out_specs=pl.BlockSpec((None, 1, 3 * O), lambda n: (n, 0, 0)),
        compiler_params=pltpu.CompilerParams(
            dimension_semantics=("parallel",)),
    )(x_col, w1k, b1r, w2k, b2r, wh, bh, eps3)

    out = out.reshape(N, 3 * O)
    return out[:, :O], out[:, O:2 * O], out[:, 2 * O:]


encoder_b5_forward = jax.jit(_forward)


def encoder_b5_apply(x, params, eps):
    q_m, q_v, latent = encoder_b5_forward(x, params, eps)
    # TODO(synk): "dist" (torch.distributions.Normal) is not representable here.
    return dict(q_m=q_m, q_v=q_v, latent=latent, sum_last=True)


# ----------------------------- plain-XLA reference ---------------------------

def _reference_forward(x, params, eps, *, matmul_dtype=jnp.float32):
    w1, b1, w2, b2, wm, bm, wv, bv = params

    def conv(h, w, b):
        y = lax.conv_general_dilated(
            h.astype(matmul_dtype), w.astype(matmul_dtype), (1, 1), "VALID",
            dimension_numbers=("NCHW", "OIHW", "NCHW"),
            preferred_element_type=jnp.float32)
        return y + b.reshape(1, -1, 1, 1)

    def pool(h):
        n, c, hh, ww = h.shape
        h = h[:, :, :(hh // 2) * 2, :(ww // 2) * 2]
        return h.reshape(n, c, hh // 2, 2, ww // 2, 2).max(axis=(3, 5))

    h = pool(_selu(conv(x, w1, b1)))
    h = pool(_selu(conv(h, w2, b2)))
    q = h.reshape(x.shape[0], -1)
    q_m = q @ wm.T + bm
    q_v = jnp.exp(jnp.clip(q @ wv.T + bv, LV_MIN, LV_MAX))
    return q_m, q_v, q_m + jnp.sqrt(q_v) * eps


# ----------------------------- main -------------------------------------------

if __name__ == "__main__":
    # p=13 so the conv/pool pipeline collapses to 1x1 (13 -> 11 -> 5 -> 3 -> 1),
    # matching the module's Linear(n_hidden, n_output) heads.
    n_batch, n_input, n_hidden, n_output, p = 2, 4, 32, 8, 13

    key = jax.random.PRNGKey(0)
    (kx, kw1, kb1, kw2, kb2, kwm, kbm, kwv, kbv, keps) = jax.random.split(key, 10)

    def uniform_init(k, shape, fan_in):
        bound = 1.0 / jnp.sqrt(float(fan_in))
        return jax.random.uniform(k, shape, jnp.float32, -bound, bound)

    x = jax.random.normal(kx, (n_batch, n_input, p, p), jnp.float32)

    # Deterministic parameter init (PyTorch-style uniform bounds).
    w1 = uniform_init(kw1, (128, n_input, 3, 3), n_input * 9)
    b1 = uniform_init(kb1, (128,), n_input * 9)
    w2 = uniform_init(kw2, (n_hidden, 128, 3, 3), 128 * 9)
    b2 = uniform_init(kb2, (n_hidden,), 128 * 9)
    wm = uniform_init(kwm, (n_output, n_hidden), n_hidden)
    bm = uniform_init(kbm, (n_output,), n_hidden)
    wv = uniform_init(kwv, (n_output, n_hidden), n_hidden)
    bv = uniform_init(kbv, (n_output,), n_hidden)
    params = (w1, b1, w2, b2, wm, bm, wv, bv)

    # Reparameterization noise (n_samples=1, squeeze=True -> shape (N, n_output)).
    eps = jax.random.normal(keps, (n_batch, n_output), jnp.float32)

    out = encoder_b5_apply(x, params, eps)
    out = {k: (jax.block_until_ready(v) if isinstance(v, jax.Array) else v)
           for k, v in out.items()}

    assert out["q_m"].shape == (n_batch, n_output)
    assert out["q_v"].shape == (n_batch, n_output)
    assert out["latent"].shape == (n_batch, n_output)
    assert bool(jnp.all(out["q_v"] > 0.0))

    # 1) Structural correctness: reference with IDENTICAL bf16 rounding at the
    #    conv matmul inputs (tight tolerance -> validates conv/pool/head math).
    r_m, r_v, r_l = jax.jit(
        partial(_reference_forward, matmul_dtype=jnp.bfloat16))(x, params, eps)
    for name, got, ref in (("q_m", out["q_m"], r_m),
                           ("q_v", out["q_v"], r_v),
                           ("latent", out["latent"], r_l)):
        assert bool(jnp.allclose(got, ref, rtol=2e-3, atol=2e-3)), f"{name} mismatch"

    # 2) End-to-end vs the pure-f32 reference (bounds the bf16 MXU-input
    #    quantization noise).
    f_m, f_v, f_l = jax.jit(_reference_forward)(x, params, eps)
    for name, got, ref in (("q_m", out["q_m"], f_m),
                           ("q_v", out["q_v"], f_v),
                           ("latent", out["latent"], f_l)):
        assert bool(jnp.allclose(got, ref, rtol=5e-2, atol=5e-2)), f"{name} f32 drift"

    print("KERNEL_OK")
</pallas_src>

<mosaic_0001>
module attributes {stable_mosaic.version = 11 : i64} {
  func.func @kernel(%arg0: i32, %arg1: memref<1x128x36xbf16, #tpu.memory_space<vmem>>, %arg2: memref<36x128xbf16, #tpu.memory_space<vmem>>, %arg3: memref<1x128xf32, #tpu.memory_space<vmem>>, %arg4: memref<1152x32xbf16, #tpu.memory_space<vmem>>, %arg5: memref<1x32xf32, #tpu.memory_space<vmem>>, %arg6: memref<32x16xf32, #tpu.memory_space<vmem>>, %arg7: memref<1x16xf32, #tpu.memory_space<vmem>>, %arg8: memref<1x1x8xf32, #tpu.memory_space<vmem>>, %arg9: memref<1x1x24xf32, #tpu.memory_space<vmem>>) attributes {dimension_semantics = [#tpu.dimension_semantics<parallel>], iteration_bounds = array<i64: 2>, scalar_prefetch = 0 : i64, scratch_operands = 0 : i64, tpu.core_type = #tpu.core_type<tc>, window_params = [{transform_indices = @transform_0, window_bounds = array<i64: 1, 128, 36>}, {pipeline_mode = #tpu.pipeline_mode<synchronous>, transform_indices = @transform_1, window_bounds = array<i64: 36, 128>}, {pipeline_mode = #tpu.pipeline_mode<synchronous>, transform_indices = @transform_2, window_bounds = array<i64: 1, 128>}, {pipeline_mode = #tpu.pipeline_mode<synchronous>, transform_indices = @transform_3, window_bounds = array<i64: 1152, 32>}, {pipeline_mode = #tpu.pipeline_mode<synchronous>, transform_indices = @transform_4, window_bounds = array<i64: 1, 32>}, {pipeline_mode = #tpu.pipeline_mode<synchronous>, transform_indices = @transform_5, window_bounds = array<i64: 32, 16>}, {pipeline_mode = #tpu.pipeline_mode<synchronous>, transform_indices = @transform_6, window_bounds = array<i64: 1, 16>}, {transform_indices = @transform_7, window_bounds = array<i64: 1, 1, 8>}, {transform_indices = @transform_8, window_bounds = array<i64: 1, 1, 24>}]} {
    %c0 = arith.constant 0 : index
    %c0_0 = arith.constant 0 : index
    %c0_1 = arith.constant 0 : index
    %0 = vector.load %arg1[%c0, %c0_0, %c0_1] : memref<1x128x36xbf16, #tpu.memory_space<vmem>>, vector<1x128x36xbf16>
    %1 = vector.shape_cast %0 : vector<1x128x36xbf16> to vector<128x36xbf16>
    %c0_2 = arith.constant 0 : index
    %c0_3 = arith.constant 0 : index
    %2 = vector.load %arg2[%c0_2, %c0_3] : memref<36x128xbf16, #tpu.memory_space<vmem>>, vector<36x128xbf16>
    %cst = arith.constant dense<0.000000e+00> : vector<128x128xf32>
    %3 = tpu.matmul %1, %2, %cst {dimension_numbers = #tpu.dot_dimension_numbers<[1], [0], [0], [1], [0, 0, 1, 1], [], []>} : vector<128x36xbf16>, vector<36x128xbf16>, vector<128x128xf32> -> vector<128x128xf32>
    %c0_4 = arith.constant 0 : index
    %c0_5 = arith.constant 0 : index
    %4 = vector.load %arg3[%c0_4, %c0_5] : memref<1x128xf32, #tpu.memory_space<vmem>>, vector<1x128xf32>
    %5 = vector.broadcast %4 : vector<1x128xf32> to vector<128x128xf32>
    %6 = arith.addf %3, %5 : vector<128x128xf32>
    %cst_6 = arith.constant 0.000000e+00 : f32
    %7 = vector.broadcast %cst_6 : f32 to vector<128x128xf32>
    %8 = arith.minimumf %6, %7 : vector<128x128xf32>
    %9 = math.exp %8 : vector<128x128xf32>
    %cst_7 = arith.constant 1.000000e+00 : f32
    %10 = vector.broadcast %cst_7 : f32 to vector<128x128xf32>
    %11 = arith.subf %9, %10 : vector<128x128xf32>
    %cst_8 = arith.constant 1.67326319 : f32
    %12 = vector.broadcast %cst_8 : f32 to vector<128x128xf32>
    %13 = arith.mulf %12, %11 : vector<128x128xf32>
    %cst_9 = arith.constant 0.000000e+00 : f32
    %14 = vector.broadcast %cst_9 : f32 to vector<128x128xf32>
    %15 = arith.cmpf ogt, %6, %14 : vector<128x128xf32>
    %16 = arith.select %15, %6, %13 : vector<128x128xi1>, vector<128x128xf32>
    %cst_10 = arith.constant 1.05070102 : f32
    %17 = vector.broadcast %cst_10 : f32 to vector<128x128xf32>
    %18 = arith.mulf %17, %16 : vector<128x128xf32>
    %19 = vector.extract_strided_slice %18 {offsets = [0, 0], sizes = [32, 128], strides = [1, 1]} : vector<128x128xf32> to vector<32x128xf32>
    %20 = vector.extract_strided_slice %18 {offsets = [32, 0], sizes = [32, 128], strides = [1, 1]} : vector<128x128xf32> to vector<32x128xf32>
    %21 = vector.extract_strided_slice %18 {offsets = [64, 0], sizes = [32, 128], strides = [1, 1]} : vector<128x128xf32> to vector<32x128xf32>
    %22 = vector.extract_strided_slice %18 {offsets = [96, 0], sizes = [32, 128], strides = [1, 1]} : vector<128x128xf32> to vector<32x128xf32>
    %23 = arith.maximumf %19, %20 : vector<32x128xf32>
    %24 = arith.maximumf %21, %22 : vector<32x128xf32>
    %25 = arith.maximumf %23, %24 : vector<32x128xf32>
    %26 = arith.truncf %25 : vector<32x128xf32> to vector<32x128xbf16>
    %27 = vector.extract_strided_slice %26 {offsets = [0, 0], sizes = [2, 128], strides = [1, 1]} : vector<32x128xbf16> to vector<2x128xbf16>
    %28 = vector.extract_strided_slice %26 {offsets = [5, 0], sizes = [2, 128], strides = [1, 1]} : vector<32x128xbf16> to vector<2x128xbf16>
    %29 = tpu.concatenate %27, %28 in 0 : vector<2x128xbf16>, vector<2x128xbf16> -> vector<4x128xbf16>
    %30 = vector.extract_strided_slice %26 {offsets = [1, 0], sizes = [2, 128], strides = [1, 1]} : vector<32x128xbf16> to vector<2x128xbf16>
    %31 = vector.extract_strided_slice %26 {offsets = [6, 0], sizes = [2, 128], strides = [1, 1]} : vector<32x128xbf16> to vector<2x128xbf16>
    %32 = tpu.concatenate %30, %31 in 0 : vector<2x128xbf16>, vector<2x128xbf16> -> vector<4x128xbf16>
    %33 = vector.extract_strided_slice %26 {offsets = [2, 0], sizes = [2, 128], strides = [1, 1]} : vector<32x128xbf16> to vector<2x128xbf16>
    %34 = vector.extract_strided_slice %26 {offsets = [7, 0], sizes = [2, 128], strides = [1, 1]} : vector<32x128xbf16> to vector<2x128xbf16>
    %35 = tpu.concatenate %33, %34 in 0 : vector<2x128xbf16>, vector<2x128xbf16> -> vector<4x128xbf16>
    %36 = vector.extract_strided_slice %26 {offsets = [5, 0], sizes = [2, 128], strides = [1, 1]} : vector<32x128xbf16> to vector<2x128xbf16>
    %37 = vector.extract_strided_slice %26 {offsets = [10, 0], sizes = [2, 128], strides = [1, 1]} : vector<32x128xbf16> to vector<2x128xbf16>
    %38 = tpu.concatenate %36, %37 in 0 : vector<2x128xbf16>, vector<2x128xbf16> -> vector<4x128xbf16>
    %39 = vector.extract_strided_slice %26 {offsets = [6, 0], sizes = [2, 128], strides = [1, 1]} : vector<32x128xbf16> to vector<2x128xbf16>
    %40 = vector.extract_strided_slice %26 {offsets = [11, 0], sizes = [2, 128], strides = [1, 1]} : vector<32x128xbf16> to vector<2x128xbf16>
    %41 = tpu.concatenate %39, %40 in 0 : vector<2x128xbf16>, vector<2x128xbf16> -> vector<4x128xbf16>
    %42 = vector.extract_strided_slice %26 {offsets = [7, 0], sizes = [2, 128], strides = [1, 1]} : vector<32x128xbf16> to vector<2x128xbf16>
    %43 = vector.extract_strided_slice %26 {offsets = [12, 0], sizes = [2, 128], strides = [1, 1]} : vector<32x128xbf16> to vector<2x128xbf16>
    %44 = tpu.concatenate %42, %43 in 0 : vector<2x128xbf16>, vector<2x128xbf16> -> vector<4x128xbf16>
    %45 = vector.extract_strided_slice %26 {offsets = [10, 0], sizes = [2, 128], strides = [1, 1]} : vector<32x128xbf16> to vector<2x128xbf16>
    %46 = vector.extract_strided_slice %26 {offsets = [15, 0], sizes = [2, 128], strides = [1, 1]} : vector<32x128xbf16> to vector<2x128xbf16>
    %47 = tpu.concatenate %45, %46 in 0 : vector<2x128xbf16>, vector<2x128xbf16> -> vector<4x128xbf16>
    %48 = vector.extract_strided_slice %26 {offsets = [11, 0], sizes = [2, 128], strides = [1, 1]} : vector<32x128xbf16> to vector<2x128xbf16>
    %49 = vector.extract_strided_slice %26 {offsets = [16, 0], sizes = [2, 128], strides = [1, 1]} : vector<32x128xbf16> to vector<2x128xbf16>
    %50 = tpu.concatenate %48, %49 in 0 : vector<2x128xbf16>, vector<2x128xbf16> -> vector<4x128xbf16>
    %51 = vector.extract_strided_slice %26 {offsets = [12, 0], sizes = [2, 128], strides = [1, 1]} : vector<32x128xbf16> to vector<2x128xbf16>
    %52 = vector.extract_strided_slice %26 {offsets = [17, 0], sizes = [2, 128], strides = [1, 1]} : vector<32x128xbf16> to vector<2x128xbf16>
    %53 = tpu.concatenate %51, %52 in 0 : vector<2x128xbf16>, vector<2x128xbf16> -> vector<4x128xbf16>
    %54 = tpu.concatenate %29, %32, %35, %38, %41, %44, %47, %50, %53 in 1 : vector<4x128xbf16>, vector<4x128xbf16>, vector<4x128xbf16>, vector<4x128xbf16>, vector<4x128xbf16>, vector<4x128xbf16>, vector<4x128xbf16>, vector<4x128xbf16>, vector<4x128xbf16> -> vector<4x1152xbf16>
    %c0_11 = arith.constant 0 : index
    %c0_12 = arith.constant 0 : index
    %55 = vector.load %arg4[%c0_11, %c0_12] : memref<1152x32xbf16, #tpu.memory_space<vmem>>, vector<1152x32xbf16>
    %cst_13 = arith.constant dense<0.000000e+00> : vector<4x32xf32>
    %56 = tpu.matmul %54, %55, %cst_13 {dimension_numbers = #tpu.dot_dimension_numbers<[1], [0], [0], [1], [0, 0, 1, 1], [], []>} : vector<4x1152xbf16>, vector<1152x32xbf16>, vector<4x32xf32> -> vector<4x32xf32>
    %c0_14 = arith.constant 0 : index
    %c0_15 = arith.constant 0 : index
    %57 = vector.load %arg5[%c0_14, %c0_15] : memref<1x32xf32, #tpu.memory_space<vmem>>, vector<1x32xf32>
    %58 = vector.broadcast %57 : vector<1x32xf32> to vector<4x32xf32>
    %59 = arith.addf %56, %58 : vector<4x32xf32>
    %cst_16 = arith.constant 0.000000e+00 : f32
    %60 = vector.broadcast %cst_16 : f32 to vector<4x32xf32>
    %61 = arith.minimumf %59, %60 : vector<4x32xf32>
    %62 = math.exp %61 : vector<4x32xf32>
    %cst_17 = arith.constant 1.000000e+00 : f32
    %63 = vector.broadcast %cst_17 : f32 to vector<4x32xf32>
    %64 = arith.subf %62, %63 : vector<4x32xf32>
    %cst_18 = arith.constant 1.67326319 : f32
    %65 = vector.broadcast %cst_18 : f32 to vector<4x32xf32>
    %66 = arith.mulf %65, %64 : vector<4x32xf32>
    %cst_19 = arith.constant 0.000000e+00 : f32
    %67 = vector.broadcast %cst_19 : f32 to vector<4x32xf32>
    %68 = arith.cmpf ogt, %59, %67 : vector<4x32xf32>
    %69 = arith.select %68, %59, %66 : vector<4x32xi1>, vector<4x32xf32>
    %cst_20 = arith.constant 1.05070102 : f32
    %70 = vector.broadcast %cst_20 : f32 to vector<4x32xf32>
    %71 = arith.mulf %70, %69 : vector<4x32xf32>
    %72 = vector.extract_strided_slice %71 {offsets = [0, 0], sizes = [1, 32], strides = [1, 1]} : vector<4x32xf32> to vector<1x32xf32>
    %73 = vector.extract_strided_slice %71 {offsets = [1, 0], sizes = [1, 32], strides = [1, 1]} : vector<4x32xf32> to vector<1x32xf32>
    %74 = arith.maximumf %72, %73 : vector<1x32xf32>
    %75 = vector.extract_strided_slice %71 {offsets = [2, 0], sizes = [1, 32], strides = [1, 1]} : vector<4x32xf32> to vector<1x32xf32>
    %76 = vector.extract_strided_slice %71 {offsets = [3, 0], sizes = [1, 32], strides = [1, 1]} : vector<4x32xf32> to vector<1x32xf32>
    %77 = arith.maximumf %75, %76 : vector<1x32xf32>
    %78 = arith.maximumf %74, %77 : vector<1x32xf32>
    %c0_21 = arith.constant 0 : index
    %c0_22 = arith.constant 0 : index
    %79 = vector.load %arg6[%c0_21, %c0_22] : memref<32x16xf32, #tpu.memory_space<vmem>>, vector<32x16xf32>
    %cst_23 = arith.constant dense<0.000000e+00> : vector<1x16xf32>
    %80 = tpu.matmul %78, %79, %cst_23 {dimension_numbers = #tpu.dot_dimension_numbers<[1], [0], [0], [1], [0, 0, 1, 1], [], []>} : vector<1x32xf32>, vector<32x16xf32>, vector<1x16xf32> -> vector<1x16xf32>
    %c0_24 = arith.constant 0 : index
    %c0_25 = arith.constant 0 : index
    %81 = vector.load %arg7[%c0_24, %c0_25] : memref<1x16xf32, #tpu.memory_space<vmem>>, vector<1x16xf32>
    %82 = arith.addf %80, %81 : vector<1x16xf32>
    %83 = vector.extract_strided_slice %82 {offsets = [0, 0], sizes = [1, 8], strides = [1, 1]} : vector<1x16xf32> to vector<1x8xf32>
    %84 = vector.extract_strided_slice %82 {offsets = [0, 8], sizes = [1, 8], strides = [1, 1]} : vector<1x16xf32> to vector<1x8xf32>
    %cst_26 = arith.constant -1.700000e+01 : f32
    %cst_27 = arith.constant 1.000000e+01 : f32
    %85 = vector.broadcast %cst_26 : f32 to vector<1x8xf32>
    %86 = arith.maximumf %85, %84 : vector<1x8xf32>
    %87 = vector.broadcast %cst_27 : f32 to vector<1x8xf32>
    %88 = arith.minimumf %87, %86 : vector<1x8xf32>
    %cst_28 = arith.constant 5.000000e-01 : f32
    %89 = vector.broadcast %cst_28 : f32 to vector<1x8xf32>
    %90 = arith.mulf %89, %88 : vector<1x8xf32>
    %91 = math.exp %90 : vector<1x8xf32>
    %92 = arith.mulf %91, %91 : vector<1x8xf32>
    %c0_29 = arith.constant 0 : index
    %c0_30 = arith.constant 0 : index
    %c0_31 = arith.constant 0 : index
    %93 = vector.load %arg8[%c0_29, %c0_30, %c0_31] : memref<1x1x8xf32, #tpu.memory_space<vmem>>, vector<1x1x8xf32>
    %94 = vector.shape_cast %93 : vector<1x1x8xf32> to vector<1x8xf32>
    %95 = arith.mulf %91, %94 : vector<1x8xf32>
    %96 = arith.addf %83, %95 : vector<1x8xf32>
    %97 = tpu.concatenate %83, %92, %96 in 1 : vector<1x8xf32>, vector<1x8xf32>, vector<1x8xf32> -> vector<1x24xf32>
    %c0_32 = arith.constant 0 : index
    %c0_33 = arith.constant 0 : index
    %c0_34 = arith.constant 0 : index
    %98 = vector.load %arg9[%c0_32, %c0_33, %c0_34] : memref<1x1x24xf32, #tpu.memory_space<vmem>>, vector<1x1x24xf32>
    %99 = vector.shape_cast %98 : vector<1x1x24xf32> to vector<1x24xf32>
    %100 = vector.shape_cast %97 : vector<1x24xf32> to vector<1x1x24xf32>
    tpu.vector_store %arg9[%c0_32, %c0_33, %c0_34], %100 {strides = array<i32>} : memref<1x1x24xf32, #tpu.memory_space<vmem>>, vector<1x1x24xf32>,
    return
  }
  func.func @transform_0(%arg0: i32) -> (i32, i32, i32) {
    %c0_i32 = arith.constant 0 : i32
    %c0_i32_0 = arith.constant 0 : i32
    %c0_i32_1 = arith.constant 0 : i32
    return %arg0, %c0_i32, %c0_i32_0 : i32, i32, i32
  }
  func.func @transform_1(%arg0: i32) -> (i32, i32) {
    %c0_i32 = arith.constant 0 : i32
    %c0_i32_0 = arith.constant 0 : i32
    %c0_i32_1 = arith.constant 0 : i32
    return %c0_i32, %c0_i32_0 : i32, i32
  }
  func.func @transform_2(%arg0: i32) -> (i32, i32) {
    %c0_i32 = arith.constant 0 : i32
    %c0_i32_0 = arith.constant 0 : i32
    %c0_i32_1 = arith.constant 0 : i32
    return %c0_i32, %c0_i32_0 : i32, i32
  }
  func.func @transform_3(%arg0: i32) -> (i32, i32) {
    %c0_i32 = arith.constant 0 : i32
    %c0_i32_0 = arith.constant 0 : i32
    %c0_i32_1 = arith.constant 0 : i32
    return %c0_i32, %c0_i32_0 : i32, i32
  }
  func.func @transform_4(%arg0: i32) -> (i32, i32) {
    %c0_i32 = arith.constant 0 : i32
    %c0_i32_0 = arith.constant 0 : i32
    %c0_i32_1 = arith.constant 0 : i32
    return %c0_i32, %c0_i32_0 : i32, i32
  }
  func.func @transform_5(%arg0: i32) -> (i32, i32) {
    %c0_i32 = arith.constant 0 : i32
    %c0_i32_0 = arith.constant 0 : i32
    %c0_i32_1 = arith.constant 0 : i32
    return %c0_i32, %c0_i32_0 : i32, i32
  }
  func.func @transform_6(%arg0: i32) -> (i32, i32) {
    %c0_i32 = arith.constant 0 : i32
    %c0_i32_0 = arith.constant 0 : i32
    %c0_i32_1 = arith.constant 0 : i32
    return %c0_i32, %c0_i32_0 : i32, i32
  }
  func.func @transform_7(%arg0: i32) -> (i32, i32, i32) {
    %c0_i32 = arith.constant 0 : i32
    %c0_i32_0 = arith.constant 0 : i32
    %c0_i32_1 = arith.constant 0 : i32
    return %arg0, %c0_i32, %c0_i32_0 : i32, i32, i32
  }
  func.func @transform_8(%arg0: i32) -> (i32, i32, i32) {
    %c0_i32 = arith.constant 0 : i32
    %c0_i32_0 = arith.constant 0 : i32
    %c0_i32_1 = arith.constant 0 : i32
    return %arg0, %c0_i32, %c0_i32_0 : i32, i32, i32
  }
}

</mosaic_0001>

<bundles_post_ra>
// kernel: _forward.1
= control target key start
LH: loop header
LB: loop body
LE: loop exit
PB: predicated region body
PF: predicated region fallthrough
CT: control target
= control target key end

     0   :  { %s2188_s27 = smov 0   ;;  %s2651_s0 = inlined_call_operand.vmem [shape: bf16[2,128,36], index: 0, kind: input, shape index: {}]   ;;  %s2652_s1 = inlined_call_operand.vmem [shape: bf16[36,128], index: 1, kind: input, shape index: {}]   ;;  %s2653_s2 = inlined_call_operand.vmem [shape: f32[1,128], index: 2, kind: input, shape index: {}]   ;;  %s2654_s3 = inlined_call_operand.vmem [shape: bf16[1152,32], index: 3, kind: input, shape index: {}]   ;;  %s2655_s4 = inlined_call_operand.vmem [shape: f32[1,32], index: 4, kind: input, shape index: {}]   ;;  %s2656_s5 = inlined_call_operand.vmem [shape: f32[32,16], index: 5, kind: input, shape index: {}]   ;;  %s2657_s6 = inlined_call_operand.vmem [shape: f32[1,16], index: 6, kind: input, shape index: {}]   ;;  %s2658_s7 = inlined_call_operand.vmem [shape: f32[2,1,8], index: 7, kind: input, shape index: {}]   ;;  %s2659_s8 = inlined_call_operand.vmem [shape: f32[2,1,24], index: 8, kind: output, shape index: {}]  }
   0x1 LB: > { %s1709_s28 = sadd.s32 4294967295, %s2136_s27   ;;  %p1713_p0 = scmp.ge.s32.totalorder %s2136_s27, 1  ;;  %s2136_s27 = sphi %s2188_s27, %s18_s27  }
   0x2   : > { %p270_p1 = scmp.lt.s32.totalorder %s2136_s27, 3 }
   0x4   : > { %p271_p2 = pnand %p1713_p0, %p270_p1 }
   0x5   : > { %p305_p3 = scmp.lt.s32.totalorder (!%p271_p2), %s1709_s28, 1  ;;  %s2140_s14 = smov (!%p271_p2), 8  }
   0x6   : > { %274 = sbr.rel (%p271_p2) target bundleno = 1033 (0x409), region = 52  ;;  %s2141_s19 = smov (!%p271_p2), 120  }
   0x7   : > { %s2142_s20 = smov (!%p271_p2), 16  }
   0xb   : > { %v2011_v0 = vld [vmem:[%s2652_s1 + $0x10] ss:$0 sps:$4 sm:$0x33]   ;;  %vm425_vm0 = vcmask 1041408   ;;  %v2012_v1 = vld [vmem:[%s2652_s1 + $0x8] sm:$0xff]   ;;  %v2013_v3 = vld [vmem:[%s2652_s1] sm:$0xff]  }
   0xc   : > { %1997 = vmatprep.subr.msk.bf16.mxu0 %vm425_vm0, %v2011_v0  ;;  %v427_v2 = vsel %vm425_vm0, %v2011_v0, 0  ;;  %s2661_s28 = smov (!%p305_p3, %s1709_s28), 1  ;;  %vm400_vm1 = vcmask 293888   ;;  %v2022_v12 = vld [vmem:[%s2654_s3 + $0x78] sm:$0xff]   ;;  %v2026_v16 = vld [vmem:[%s2654_s3 + $0x70] sm:$0xff]   ;;  %v2030_v20 = vld [vmem:[%s2654_s3 + $0x68] sm:$0xff]  }
   0xd   : > { %1945 = vmatpush3.bf16.msra.mxu0 %v427_v2  ;;  %s1830_s13 = sshll.u32 %s2661_s28, 6  ;;  %v2023_v13 = vld [vmem:[%s2654_s3 + $0xf8] sm:$0xff]   ;;  %1842 = vmatprep.subr.bf16.mxu1 %v2022_v12  ;;  %v2027_v17 = vld [vmem:[%s2654_s3 + $0xf0] sm:$0xff]   ;;  %v2031_v21 = vld [vmem:[%s2654_s3 + $0xe8] sm:$0xff]   ;;  %s312_s11 = scalar_lea.vmem %s2658_s7, %s2661_s28 }
   0xe   : > { %1946 = vmatprep.subr.bf16.mxu0 %v2012_v1  ;;  %s309_s16 = scalar_lea.vmem %s2651_s0, %s1830_s13  ;;  %v2024_v14 = vld [vmem:[%s2654_s3 + $0x38] sm:$0xff]   ;;  %v2028_v18 = vld [vmem:[%s2654_s3 + $0x30] sm:$0xff]   ;;  %v2032_v22 = vld [vmem:[%s2654_s3 + $0x28] sm:$0xff]   ;;  %s315_s23 = scalar_lea.vmem %s2659_s8, %s2661_s28 }
   0xf   : > { %v2014_v4 = vld [vmem:[%s309_s16] sm:$0xff]   ;;  %v2015_v5 = vld [vmem:[%s309_s16 + $0x8] sm:$0xff]   ;;  %v2016_v6 = vld [vmem:[%s309_s16 + $0x10] sm:$0xff]   ;;  %1843 = vmatpush3.bf16.msra.mxu1 %v2024_v14 }
  0x10   : > { %1950 = vmatprep.mubr.msk.bf16.mxu0 %vm400_vm1, %v2014_v4  ;;  %v2017_v7 = vld [vmem:[%s309_s16 + $0x18] sm:$0xff]   ;;  %v2018_v8 = vld [vmem:[%s309_s16 + $0x20] sm:$0xff]   ;;  %v2019_v9 = vld [vmem:[%s309_s16 + $0x28] sm:$0xff]   ;;  %1844 = vmatprep.subr.bf16.mxu1 %v2026_v16 }
  0x11   : > { %1947 = vmatpush3.bf16.msra.mxu0 %v2012_v1  ;;  %v2020_v10 = vld [vmem:[%s309_s16 + $0x30] sm:$0xff]   ;;  %v2021_v11 = vld [vmem:[%s309_s16 + $0x38] sm:$0xff]   ;;  %v2033_v23 = vld [vmem:[%s2654_s3 + $0xa8] sm:$0xff]  }
  0x12   : > { %1948 = vmatprep.subr.bf16.mxu0 %v2013_v3  ;;  %v2025_v15 = vld [vmem:[%s2654_s3 + $0xb8] sm:$0xff]   ;;  %v2029_v19 = vld [vmem:[%s2654_s3 + $0xb0] sm:$0xff]   ;;  %v2034_v24 = vld [vmem:[%s2654_s3 + $0x60] sm:$0xff]  }
  0x13   : > { %1845 = vmatpush3.bf16.msra.mxu1 %v2028_v18  ;;  %v2035_v25 = vld [vmem:[%s2654_s3 + $0xe0] sm:$0xff]   ;;  %v2038_v28 = vld [vmem:[%s2654_s3 + $0x58] sm:$0xff]   ;;  %v2042_v32 = vld [vmem:[%s2654_s3 + $0x50] sm:$0xff]  }
  0x14   : > { %1846 = vmatprep.subr.bf16.mxu1 %v2030_v20  ;;  %v2036_v26 = vld [vmem:[%s2654_s3 + $0x20] sm:$0xff]   ;;  %v2039_v29 = vld [vmem:[%s2654_s3 + $0xd8] sm:$0xff]   ;;  %v2043_v33 = vld [vmem:[%s2654_s3 + $0xd0] sm:$0xff]  }
  0x15   : > { %1949 = vmatpush3.bf16.msra.mxu0 %v2013_v3  ;;  %v2037_v27 = vld [vmem:[%s2654_s3 + $0xa0] sm:$0xff]   ;;  %v2040_v30 = vld [vmem:[%s2654_s3 + $0x18] sm:$0xff]   ;;  %v2044_v34 = vld [vmem:[%s2654_s3 + $0x10] sm:$0xff]  }
  0x16   : > { %1864 = vmatprep.subr.bf16.mxu0 %v2023_v13  ;;  %v2041_v31 = vld [vmem:[%s2654_s3 + $0x98] sm:$0xff]   ;;  %v2045_v35 = vld [vmem:[%s2654_s3 + $0x90] sm:$0xff]   ;;  %v2046_v36 = vld [vmem:[%s2654_s3 + $0x48] sm:$0xff]  }
  0x17   : > { %1847 = vmatpush3.bf16.msra.mxu1 %v2032_v22  ;;  %v2047_v37 = vld [vmem:[%s2654_s3 + $0xc8] sm:$0xff]   ;;  %v2050_v40 = vld [vmem:[%s2654_s3 + $0x40] sm:$0xff]   ;;  %v2054_v44 = vld [vmem:[%s2654_s3 + $0x178] sm:$0xff]  }
  0x18   : > { %1951 = vmatmul.mubr.msk.bf16.vlgmr.msra.gmra.mxu0 %vm400_vm1, %v2015_v5  ;;  %1848 = vmatprep.subr.bf16.mxu1 %v2034_v24  ;;  %v2048_v38 = vld [vmem:[%s2654_s3 + $0x8] sm:$0xff]   ;;  %v2051_v41 = vld [vmem:[%s2654_s3 + $0xc0] sm:$0xff]   ;;  %v2055_v45 = vld [vmem:[%s2654_s3 + $0x1f8] sm:$0xff]  }
  0x19   : > { %1954 = vmatprep.mubr.msk.bf16.mxu0 %vm400_vm1, %v2016_v6  ;;  %1865 = vmatpush3.bf16.msra.mxu0 %v2025_v15  ;;  %v2049_v39 = vld [vmem:[%s2654_s3 + $0x88] sm:$0xff]   ;;  %v2052_v42 = vld [vmem:[%s2654_s3] sm:$0xff]  }
  0x1a   : > { %1866 = vmatprep.subr.bf16.mxu0 %v2027_v17  ;;  %v2053_v43 = vld [vmem:[%s2654_s3 + $0x80] sm:$0xff]  }
  0x1b   : > { %1849 = vmatpush3.bf16.msra.mxu1 %v2036_v26  ;;  %v2324_v47 = vld [vmem:[%s2653_s2] ss:$0 sm:$0xff] }
  0x1c   : > { %1850 = vmatprep.subr.bf16.mxu1 %v2038_v28 }
  0x1d   : > { %1867 = vmatpush3.bf16.msra.mxu0 %v2029_v19 }
  0x1e   : > { %1868 = vmatprep.subr.bf16.mxu0 %v2031_v21 }
  0x1f   : > { %1851 = vmatpush3.bf16.msra.mxu1 %v2040_v30 }
  0x20   : > { %1955 = vmatmul.mubr.msk.bf16.gmra.mxu0 %vm400_vm1, %v2017_v7  ;;  %1852 = vmatprep.subr.bf16.mxu1 %v2042_v32 }
  0x21   : > { %1958 = vmatprep.mubr.msk.bf16.mxu0 %vm400_vm1, %v2018_v8  ;;  %1869 = vmatpush3.bf16.msra.mxu0 %v2033_v23 }
  0x22   : > { %1870 = vmatprep.subr.bf16.mxu0 %v2035_v25 }
  0x23   : > { %1853 = vmatpush3.bf16.msra.mxu1 %v2044_v34 }
  0x24   : > { %1854 = vmatprep.subr.bf16.mxu1 %v2046_v36 }
  0x25   : > { %1871 = vmatpush3.bf16.msra.mxu0 %v2037_v27 }
  0x26   : > { %1872 = vmatprep.subr.bf16.mxu0 %v2039_v29 }
  0x27   : > { %1855 = vmatpush3.bf16.msra.mxu1 %v2048_v38 }
  0x28   : > { %1959 = vmatmul.mubr.msk.bf16.gmra.mxu0 %vm400_vm1, %v2019_v9  ;;  %1856 = vmatprep.subr.bf16.mxu1 %v2050_v40 }
  0x29   : > { %1962 = vmatprep.mubr.msk.bf16.mxu0 %vm400_vm1, %v2020_v10  ;;  %1873 = vmatpush3.bf16.msra.mxu0 %v2041_v31 }
  0x2a   : > { %1874 = vmatprep.subr.bf16.mxu0 %v2043_v33 }
  0x2b   : > { %1857 = vmatpush3.bf16.msra.mxu1 %v2052_v42 }
  0x2c   : > { %1886 = vmatprep.subr.bf16.mxu1 %v2054_v44 }
  0x2d   : > { %1875 = vmatpush3.bf16.msra.mxu0 %v2045_v35 }
  0x2e   : > { %1876 = vmatprep.subr.bf16.mxu0 %v2047_v37 }
  0x30   : > { %1963 = vmatmul.mubr.msk.bf16.gmra.mxu0 %vm400_vm1, %v2021_v11 }
  0x31   : > { %1877 = vmatpush3.bf16.msra.mxu0 %v2049_v39 }
  0x32   : > { %1878 = vmatprep.subr.bf16.mxu0 %v2051_v41 }
  0x35   : > { %1879 = vmatpush3.bf16.msra.mxu0 %v2053_v43 }
  0x36   : > { %1908 = vmatprep.subr.bf16.mxu0 %v2055_v45 }
  0xd8   : > { %v1952_v46 = vpop.f32.mrf.mxu0 }
  0xd9   : > { %v2327_v50 = vadd.f32 %v1952_v46, %v2324_v47 }
  0xda   : > { %v463_v48 = vpop.f32.mrf.mxu0 }
  0xdb   : > { %v2330_v51 = vadd.f32 %v2324_v47, %v463_v48  ;;  %v528_v55 = vmin.f32 %v2327_v50, 0.0  ;;  %vm608_vm2 = vcmp.gt.f32.partialorder %v2327_v50, 0.0 }
  0xdc   : > { %v1953_v49 = vpop.f32.mrf.mxu0 }
  0xdd   : > { %v2333_v53 = vadd.f32 %v1953_v49, %v2324_v47  ;;  %v526_v56 = vmin.f32 %v2330_v51, 0.0  ;;  %v546_v62 = vmul.f32 1.442695, %v528_v55  ;;  %vm606_vm3 = vcmp.gt.f32.partialorder %v2330_v51, 0.0 }
  0xde   : > { %v466_v52 = vpop.f32.mrf.mxu0 }
  0xdf   : > { %v529_v59 = vmin.f32 %v2333_v53, 0.0  ;;  %v2342_v60 = vadd.f32 %v2324_v47, %v466_v52  ;;  %v542_v0 = vmul.f32 1.442695, %v526_v56  ;;  %2094 = vpow2.f32 %v546_v62 }
  0xe0   : > { %v1956_v54 = vpop.f32.mrf.mxu0  ;;  %vm609_vm4 = vcmp.gt.f32.partialorder %v2333_v53, 0.0 }
  0xe1   : > { %v2338_v57 = vadd.f32 %v1956_v54, %v2324_v47  ;;  %v548_v4 = vmul.f32 1.442695, %v529_v59  ;;  %v527_v5 = vmin.f32 %v2342_v60, 0.0  ;;  %2096 = vpow2.f32 %v542_v0 }
  0xe2   : > { %v479_v58 = vpop.f32.mrf.mxu0  ;;  %vm607_vm5 = vcmp.gt.f32.partialorder %v2342_v60, 0.0 }
  0xe3   : > { %v2345_v63 = vadd.f32 %v2324_v47, %v479_v58  ;;  %v532_v1 = vmin.f32 %v2338_v57, 0.0  ;;  %2098 = vpow2.f32 %v548_v4  ;;  %v544_v15 = vmul.f32 1.442695, %v527_v5 }
  0xe4   : > { %v1957_v61 = vpop.f32.mrf.mxu0  ;;  %vm612_vm6 = vcmp.gt.f32.partialorder %v2338_v57, 0.0 }
  0xe5   : > { %v2349_v2 = vadd.f32 %v1957_v61, %v2324_v47  ;;  %v530_v8 = vmin.f32 %v2345_v63, 0.0  ;;  %v554_v10 = vmul.f32 1.442695, %v532_v1  ;;  %vm610_vm7 = vcmp.gt.f32.partialorder %v2345_v63, 0.0 }
  0xe6   : > { %v482_v3 = vpop.f32.mrf.mxu0 }
  0xe7   : > { %v2353_v6 = vadd.f32 %v2324_v47, %v482_v3  ;;  %v533_v11 = vmin.f32 %v2349_v2, 0.0  ;;  %v550_v18 = vmul.f32 1.442695, %v530_v8  ;;  %2100 = vpow2.f32 %v554_v10 }
  0xe8   : > { %v1960_v7 = vpop.f32.mrf.mxu0  ;;  %2102 = vpow2.f32 %v544_v15  ;;  %vm613_vm8 = vcmp.gt.f32.partialorder %v2349_v2, 0.0 }
  0xe9   : > { %v2357_v9 = vadd.f32 %v1960_v7, %v2324_v47  ;;  %v531_v13 = vmin.f32 %v2353_v6, 0.0  ;;  %v556_v20 = vmul.f32 1.442695, %v533_v11  ;;  %2104 = vpow2.f32 %v550_v18 }
  0xea   : > { %v495_v12 = vpop.f32.mrf.mxu0  ;;  %vm611_vm9 = vcmp.gt.f32.partialorder %v2353_v6, 0.0 }
  0xeb   : > { %v2362_v14 = vadd.f32 %v2324_v47, %v495_v12  ;;  %v536_v16 = vmin.f32 %v2357_v9, 0.0  ;;  %v552_v23 = vmul.f32 1.442695, %v531_v13  ;;  %2106 = vpow2.f32 %v556_v20 }
  0xec   : > { %v1961_v17 = vpop.f32.mrf.mxu0  ;;  %v2095_v37 = vpop.eup %2094  ;;  %vm616_vm10 = vcmp.gt.f32.partialorder %v2357_v9, 0.0 }
  0xed   : > { %v534_v19 = vmin.f32 %v2362_v14, 0.0  ;;  %v2367_v21 = vadd.f32 %v1961_v17, %v2324_v47  ;;  %v562_v24 = vmul.f32 1.442695, %v536_v16  ;;  %2108 = vpow2.f32 %v552_v23 }
  0xee   : > { %v498_v22 = vpop.f32.mrf.mxu0  ;;  %v2097_v40 = vpop.eup %2096  ;;  %v1738_v46 = vadd.f32 -1.0, %v2095_v37  ;;  %vm614_vm11 = vcmp.gt.f32.partialorder %v2362_v14, 0.0 }
  0xef   : > { %v537_v25 = vmin.f32 %v2367_v21, 0.0  ;;  %v2371_v26 = vadd.f32 %v2324_v47, %v498_v22  ;;  %v558_v28 = vmul.f32 1.442695, %v534_v19  ;;  %2110 = vpow2.f32 %v562_v24 }
  0xf0   : > { %v1964_v27 = vpop.f32.mrf.mxu0  ;;  %v2099_v42 = vpop.eup %2098  ;;  %v1736_v48 = vadd.f32 -1.0, %v2097_v40  ;;  %v592_v62 = vmul.f32 1.6732632, %v1738_v46  ;;  %vm617_vm12 = vcmp.gt.f32.partialorder %v2367_v21, 0.0 }
  0xf1   : > { %v564_v29 = vmul.f32 1.442695, %v537_v25  ;;  %v535_v30 = vmin.f32 %v2371_v26, 0.0  ;;  %v2375_v32 = vadd.f32 %v1964_v27, %v2324_v47  ;;  %2112 = vpow2.f32 %v558_v28 }
  0xf2   : > { %v511_v31 = vpop.f32.mrf.mxu0  ;;  %v1739_v54 = vadd.f32 -1.0, %v2099_v42  ;;  %v590_v0 = vmul.f32 1.6732632, %v1736_v48  ;;  %v624_v8 = vsel %vm608_vm2, %v2327_v50, %v592_v62  ;;  %vm615_vm13 = vcmp.gt.f32.partialorder %v2371_v26, 0.0 }
  0xf3   : > { %v2378_v33 = vadd.f32 %v2324_v47, %v511_v31  ;;  %v560_v34 = vmul.f32 1.442695, %v535_v30  ;;  %v540_v36 = vmin.f32 %v2375_v32, 0.0  ;;  %2114 = vpow2.f32 %v564_v29 }
  0xf4   : > { %v1965_v35 = vpop.f32.mrf.mxu0  ;;  %v2101_v52 = vpop.eup %2100  ;;  %v593_v3 = vmul.f32 1.6732632, %v1739_v54  ;;  %v622_v10 = vsel %vm606_vm3, %v2330_v51, %v590_v0  ;;  %v2403_v50 = vmul.f32 1.050701, %v624_v8  ;;  %vm620_vm14 = vcmp.gt.f32.partialorder %v2375_v32, 0.0 }
  0xf5   : > { %v538_v38 = vmin.f32 %v2378_v33, 0.0  ;;  %2116 = vpow2.f32 %v560_v34  ;;  %v570_v41 = vmul.f32 1.442695, %v540_v36  ;;  %v2383_v44 = vadd.f32 %v1965_v35, %v2324_v47  ;;  %v2103_v58 = vpop.eup %2102 }
  0xf6   : > { %v514_v39 = vpop.f32.mrf.mxu0  ;;  %v2105_v61 = vpop.eup %2104  ;;  %v1742_v1 = vadd.f32 -1.0, %v2101_v52  ;;  %v1737_v11 = vadd.f32 -1.0, %v2103_v58  ;;  %v625_v15 = vsel %vm609_vm4, %v2333_v53, %v593_v3  ;;  %v2405_v51 = vmul.f32 1.050701, %v622_v10 }
  0xf7   : > { %v566_v43 = vmul.f32 1.442695, %v538_v38  ;;  %v2386_v45 = vadd.f32 %v2324_v47, %v514_v39  ;;  %2118 = vpow2.f32 %v570_v41  ;;  %v541_v49 = vmin.f32 %v2383_v44, 0.0 }
  0xf8   : > { %v2107_v47 = vpop.eup %2106  ;;  %v596_v12 = vmul.f32 1.6732632, %v1742_v1  ;;  %v1740_v16 = vadd.f32 -1.0, %v2105_v61  ;;  %v2408_v23 = vmul.f32 1.050701, %v625_v15  ;;  %vm618_vm15 = vcmp.gt.f32.partialorder %v2378_v33, 0.0 }
  0xf9   : > { %2120 = vpow2.f32 %v566_v43  ;;  %v539_v55 = vmin.f32 %v2386_v45, 0.0  ;;  %v572_v56 = vmul.f32 1.442695, %v541_v49  ;;  %v1743_v17 = vadd.f32 -1.0, %v2107_v47 }
  0xfa   : > { %v2109_v4 = vpop.eup %2108  ;;  %v591_v53 = vmul.f32 1.6732632, %v1737_v11  ;;  %v628_v24 = vsel %vm612_vm6, %v2338_v57, %v596_v12  ;;  %v594_v28 = vmul.f32 1.6732632, %v1740_v16  ;;  %vm621_vm0 = vcmp.gt.f32.partialorder %v2383_v44, 0.0 }
  0xfb   : > { %v568_v59 = vmul.f32 1.442695, %v539_v55  ;;  %2122 = vpow2.f32 %v572_v56  ;;  %v1741_v19 = vadd.f32 -1.0, %v2109_v4  ;;  %v597_v29 = vmul.f32 1.6732632, %v1743_v17 }
  0xfc   : > { %v2111_v5 = vpop.eup %2110  ;;  %v644_v37 = vmul.f32 1.050701, %v628_v24  ;;  %v623_v57 = vsel %vm607_vm5, %v2342_v60, %v591_v53  ;;  %v626_v43 = vsel %vm610_vm7, %v2345_v63, %v594_v28  ;;  %vm619_vm1 = vcmp.gt.f32.partialorder %v2386_v45, 0.0 }
  0xfd   : > { %2124 = vpow2.f32 %v568_v59  ;;  %v1746_v20 = vadd.f32 -1.0, %v2111_v5  ;;  %v595_v34 = vmul.f32 1.6732632, %v1741_v19  ;;  %v629_v46 = vsel %vm613_vm8, %v2349_v2, %v597_v29 }
  0xfe   : > { %v2113_v7 = vpop.eup %2112  ;;  %v645_v0 = vmul.f32 1.050701, %v629_v46  ;;  %v639_v8 = vmul.f32 1.050701, %v623_v57  ;;  %vm676_vm2 = vcmask 1040384   ;;  %vm2139_vm4 = vmmov 0  }
  0xff   : > { %v1744_v22 = vadd.f32 -1.0, %v2113_v7  ;;  %v600_v35 = vmul.f32 1.6732632, %v1746_v20  ;;  %v627_v60 = vsel %vm611_vm9, %v2353_v6, %v595_v34  ;;  %v642_v6 = vmul.f32 1.050701, %v626_v43 }
 0x100   : > { %v2115_v13 = vpop.eup %2114  ;;  %v643_v47 = vmul.f32 1.050701, %v627_v60  ;;  %vm716_vm3 = vsmask.f32 1280  ;;  %vm1548_vm6 = vcmask 261120   ;;  %vm1647_vm7 = vcmask 64512  }
 0x101   : > { %v1747_v25 = vadd.f32 -1.0, %v2115_v13  ;;  %v598_v38 = vmul.f32 1.6732632, %v1744_v22  ;;  %v632_v54 = vsel %vm616_vm10, %v2357_v9, %v600_v35  ;;  %v657_v13 = vmax.f32 %v2408_v23, %v645_v0  ;;  %v2063_v0 = vld [vmem:[%s2654_s3 + $0x1e8] sm:$0xff]  }
 0x102   : > { %v2117_v18 = vpop.eup %2116  ;;  %v654_v16 = vmax.f32 %v2405_v51, %v642_v6  ;;  %v655_v17 = vmax.f32 %v639_v8, %v643_v47  ;;  %v2064_v47 = vld [vmem:[%s2654_s3 + $0x128] sm:$0xff]   ;;  %v2071_v8 = vld [vmem:[%s2654_s3 + $0x1d8] sm:$0xff]   ;;  %vm1649_vm8 = vcmask 130048   ;;  %vm1651_vm9 = vcmask 188416  }
 0x103   : > { %v1745_v30 = vadd.f32 -1.0, %v2117_v18  ;;  %v601_v40 = vmul.f32 1.6732632, %v1747_v25  ;;  %v630_v2 = vsel %vm614_vm11, %v2362_v14, %v598_v38 }
 0x104   : > { %v2119_v27 = vpop.eup %2118  ;;  %v646_v3 = vmul.f32 1.050701, %v630_v2  ;;  %v2059_v2 = vld [vmem:[%s2654_s3 + $0x1f0] sm:$0xff]  }
 0x105   : > { %v1750_v36 = vadd.f32 -1.0, %v2119_v27  ;;  %v599_v48 = vmul.f32 1.6732632, %v1745_v30  ;;  %v633_v9 = vsel %vm617_vm12, %v2367_v21, %v601_v40 }
 0x106   : > { %v2121_v31 = vpop.eup %2120  ;;  %v649_v4 = vmul.f32 1.050701, %v633_v9  ;;  %v2060_v9 = vld [vmem:[%s2654_s3 + $0x130] sm:$0xff]  }
 0x107   : > { %v1748_v39 = vadd.f32 -1.0, %v2121_v31  ;;  %v604_v41 = vmul.f32 1.6732632, %v1750_v36  ;;  %v631_v1 = vsel %vm615_vm13, %v2371_v26, %v599_v48  ;;  %v656_v26 = vmax.f32 %v2403_v50, %v644_v37 }
 0x108   : > { %v2123_v42 = vpop.eup %2122  ;;  %v647_v10 = vmul.f32 1.050701, %v631_v1 }
 0x109   : > { %v602_v49 = vmul.f32 1.6732632, %v1748_v39  ;;  %v636_v55 = vsel %vm620_vm14, %v2375_v32, %v604_v41  ;;  %v1751_v63 = vadd.f32 -1.0, %v2123_v42  ;;  %v648_v32 = vmul.f32 1.050701, %v632_v54  ;;  %v2056_v41 = vld [vmem:[%s2654_s3 + $0x138] sm:$0xff]  }
 0x10a   : > { %v2125_v52 = vpop.eup %2124  ;;  %v652_v56 = vmul.f32 1.050701, %v636_v55  ;;  %v2057_v42 = vld [vmem:[%s2654_s3 + $0x1b8] sm:$0xff]  }
 0x10b   : > { %v634_v58 = vsel %vm618_vm15, %v2378_v33, %v602_v49  ;;  %v1749_v59 = vadd.f32 -1.0, %v2125_v52  ;;  %v605_v62 = vmul.f32 1.6732632, %v1751_v63  ;;  %v2058_v63 = vld [vmem:[%s2654_s3 + $0x170] sm:$0xff]  }
 0x10c   : > { %v650_v61 = vmul.f32 1.050701, %v634_v58  ;;  %v660_v5 = vmax.f32 %v648_v32, %v652_v56 }
 0x10d   : > { %v603_v14 = vmul.f32 1.6732632, %v1749_v59  ;;  %v637_v33 = vsel %vm621_vm0, %v2383_v44, %v605_v62  ;;  %v2062_v62 = vld [vmem:[%s2654_s3 + $0x168] sm:$0xff]  }
 0x10e   : > { %v653_v21 = vmul.f32 1.050701, %v637_v33  ;;  %v658_v11 = vmax.f32 %v646_v3, %v650_v61  ;;  %v664_v18 = vmax.f32 %v656_v26, %v660_v5  ;;  %v2061_v61 = vld [vmem:[%s2654_s3 + $0x1b0] sm:$0xff]   ;;  %v2065_v3 = vld [vmem:[%s2654_s3 + $0x1a8] sm:$0xff]   ;;  %v2066_v33 = vld [vmem:[%s2654_s3 + $0x160] sm:$0xff]  }
 0x10f   : > { %v635_v7 = vsel %vm619_vm1, %v2386_v45, %v603_v14  ;;  %v2068_v5 = vld [vmem:[%s2654_s3 + $0x120] sm:$0xff]   ;;  %v2075_v26 = vld [vmem:[%s2654_s3 + $0x1d0] sm:$0xff]  }
 0x110   : > { %v651_v12 = vmul.f32 1.050701, %v635_v7  ;;  %v661_v15 = vmax.f32 %v649_v4, %v653_v21  ;;  %v662_v20 = vmax.f32 %v654_v16, %v658_v11  ;;  %v2067_v4 = vld [vmem:[%s2654_s3 + $0x1e0] sm:$0xff]   ;;  %v2070_v7 = vld [vmem:[%s2654_s3 + $0x158] sm:$0xff]   ;;  %v2078_v16 = vld [vmem:[%s2654_s3 + $0x148] sm:$0xff]  }
 0x111   : > { %v2069_v21 = vld [vmem:[%s2654_s3 + $0x1a0] sm:$0xff]   ;;  %v2073_v11 = vld [vmem:[%s2654_s3 + $0x198] sm:$0xff]  }
 0x112   : > { %v659_v44 = vmax.f32 %v647_v10, %v651_v12  ;;  %v665_v19 = vmax.f32 %v657_v13, %v661_v15  ;;  %v2072_v10 = vld [vmem:[%s2654_s3 + $0x118] sm:$0xff]   ;;  %v2074_v12 = vld [vmem:[%s2654_s3 + $0x150] sm:$0xff]  }
 0x113   : > { %v2076_v13 = vld [vmem:[%s2654_s3 + $0x110] sm:$0xff]  }
 0x114   : > { %v663_v22 = vmax.f32 %v655_v17, %v659_v44  ;;  %v2455_v53 = vpack.c.bf16 %v665_v19, %v664_v18  ;;  %v2077_v15 = vld [vmem:[%s2654_s3 + $0x190] sm:$0xff]   ;;  %v2079_v17 = vld [vmem:[%s2654_s3 + $0x1c8] sm:$0xff]   ;;  %v2082_v19 = vld [vmem:[%s2654_s3 + $0x140] sm:$0xff]  }
 0x115   : > { %v2080_v44 = vld [vmem:[%s2654_s3 + $0x108] sm:$0xff]  }
 0x116   : > { %v2457_v45 = vpack.c.bf16 %v663_v22, %v662_v20  ;;  %v736_v25 = vshrl.u32 %v2455_v53, 16  ;;  %v730_v55 = vrot.slane %v2455_v53, 7  ;;  %v719_v56 = vshll.u32 %v2455_v53, 16  ;;  %v2081_v18 = vld [vmem:[%s2654_s3 + $0x188] sm:$0xff]   ;;  %v2083_v20 = vld [vmem:[%s2654_s3 + $0x1c0] sm:$0xff]  }
 0x118   : > { %v2460_v24 = vshrl.u32 %v2457_v45, 16  ;;  %v2463_v50 = vshll.u32 %v2457_v45, 16  ;;  %v683_v23 = vrot.slane %v2457_v45, 2  ;;  %v696_v51 = vrot.slane %v2457_v45, 4 }
 0x119   : > { %v688_v39 = vrot.slane %v2457_v45, 1  ;;  %v711_v54 = vrot.slane %v2457_v45, 5  ;;  %v738_v58 = vrot.slane %v736_v25, 7  ;;  %v735_v32 = vrot.slane %v2457_v45, 6  ;;  %v2084_v25 = vld [vmem:[%s2654_s3 + $0x100] sm:$0xff]  }
 0x11a   : > { %v680_v27 = vrot.slane %v2463_v50, 1  ;;  %v689_v28 = vrot.slane %v2460_v24, 2  ;;  %v690_v29 = vrot.slane %v2463_v50, 3  ;;  %v671_v30 = vrot.slane %v2460_v24, 1 }
 0x11b   : > { %v674_v31 = vrot.slane %v2463_v50, 2  ;;  %v708_v34 = vrot.slane %v2460_v24, 3  ;;  %v709_v35 = vrot.slane %v2463_v50, 4  ;;  %v726_v36 = vrot.slane %v2460_v24, 5 }
 0x11c   : > { %v681_v37 = vor.u32 %v680_v27, %v2460_v24  ;;  %v691_v38 = vor.u32 %v690_v29, %v689_v28  ;;  %v727_v57 = vrot.slane %v2463_v50, 6  ;;  %v739_v1 = vor.u32 %v738_v58, %v719_v56  ;;  %v2085_v27 = vld [vmem:[%s2654_s3 + $0x180] sm:$0xff]  }
 0x11d   : > { %v675_v40 = vor.u32 %v674_v31, %v671_v30  ;;  %v710_v43 = vor.u32 %v709_v35, %v708_v34  ;;  %v701_v22 = vrot.slane %v2460_v24, 4  ;;  %v721_v28 = vrot.slane %v719_v56, 7  ;;  %v2086_v30 = vld [vmem:[%s2654_s3 + $0x238] sm:$0xff]   ;;  %v2087_v35 = vld [vmem:[%s2654_s3 + $0x230] sm:$0xff]  }
 0x11e   : > { %v686_v46 = vsel %vm676_vm2, %v681_v37, %v683_v23  ;;  %v698_v48 = vsel %vm676_vm2, %v691_v38, %v696_v51  ;;  %v694_v49 = vsel %vm676_vm2, %v688_v39, %v691_v38  ;;  %v728_v52 = vor.u32 %v727_v57, %v726_v36  ;;  %v2088_v36 = vld [vmem:[%s2654_s3 + $0x228] sm:$0xff]   ;;  %v2090_v37 = vld [vmem:[%s2654_s3 + $0x218] sm:$0xff]   ;;  %v2091_v38 = vld [vmem:[%s2654_s3 + $0x210] sm:$0xff]  }
 0x11f   : > { %1359 = vmatprep.mubr.bf16.mxu1 %v686_v46  ;;  %1399 = vmatprep.mubr.bf16.mxu0 %v698_v48  ;;  %v678_v60 = vsel %vm676_vm2, %v2457_v45, %v675_v40  ;;  %v714_v59 = vsel %vm676_vm2, %v710_v43, %v711_v54  ;;  %v2519_v14 = vsel %vm676_vm2, %v735_v32, %v739_v1  ;;  %v702_v23 = vrot.slane %v2463_v50, 5  ;;  %v2092_v39 = vld [vmem:[%s2654_s3 + $0x208] sm:$0xff]   ;;  %v2093_v57 = vld [vmem:[%s2654_s3 + $0x200] sm:$0xff]   ;;  %v1546_v40 = vld [vmem:[%s2656_s5 + $0x18] sm:$0xff] }
 0x120   : > { %1360 = vmatmul.mubr.bf16.vlgmr.msra.gmra.mxu1 %v678_v60  ;;  %1400 = vmatmul.mubr.bf16.vlgmr.msra.gmra.mxu0 %v694_v49  ;;  %v733_v6 = vsel %vm676_vm2, %v728_v52, %v730_v55  ;;  %v717_v51 = vrot.slane %v2460_v24, 6  ;;  %v700_v24 = vrot.slane %v2457_v45, 3  ;;  %v2138_v31 = vmov 0.0   ;;  %v2089_v45 = vld [vmem:[%s2654_s3 + $0x220] sm:$0xff]  }
 0x121   : > { %1887 = vmatpush3.bf16.msra.mxu1 %v2056_v41  ;;  %1909 = vmatpush3.bf16.msra.mxu0 %v2057_v42  ;;  %v703_v29 = vor.u32 %v702_v23, %v701_v22  ;;  %v1545_v41 = vld [vmem:[%s2656_s5 + $0x10] sm:$0xff]  ;;  %v1544_v42 = vld [vmem:[%s2656_s5 + $0x8] sm:$0xff]  ;;  %v1827_v43 = vld [vmem:[%s312_s11] ss:$0 sm:$0xff] }
 0x122   : > { %1439 = vmatprep.mubr.bf16.mxu1 %v714_v59  ;;  %1479 = vmatprep.mubr.bf16.mxu0 %v733_v6  ;;  %v722_v50 = vsel %vm716_vm3, %v717_v51, %v721_v28  ;;  %v1543_v46 = vld [vmem:[%s2656_s5] sm:$0xff] }
 0x123   : > { %1888 = vmatprep.subr.bf16.mxu1 %v2058_v63  ;;  %1910 = vmatprep.subr.bf16.mxu0 %v2059_v2  ;;  %v706_v34 = vsel %vm676_vm2, %v700_v24, %v703_v29  ;;  %v724_v53 = vsel %vm676_vm2, %v711_v54, %v722_v50  ;;  %v1752_v1 = vld [vmem:[%s2655_s4] ss:$0 sm:$0xff] }
 0x124   : > { %1634 = vrot.lane.b32.xlu0 %v1827_v43, %s2140_s14  ;;  %v1547_v51 = vld [vmem:[%s2657_s6] sm:$0x1] }
 0x125   : > { %1889 = vmatpush3.bf16.msra.mxu1 %v2060_v9  ;;  %1911 = vmatpush3.bf16.msra.mxu0 %v2061_v61 }
 0x126   : > { %1890 = vmatprep.subr.bf16.mxu1 %v2062_v62  ;;  %1912 = vmatprep.subr.bf16.mxu0 %v2063_v0 }
 0x129   : > { %1891 = vmatpush3.bf16.msra.mxu1 %v2064_v47  ;;  %1913 = vmatpush3.bf16.msra.mxu0 %v2065_v3 }
 0x12a   : > { %1892 = vmatprep.subr.bf16.mxu1 %v2066_v33  ;;  %1914 = vmatprep.subr.bf16.mxu0 %v2067_v4 }
 0x12d   : > { %1893 = vmatpush3.bf16.msra.mxu1 %v2068_v5  ;;  %1915 = vmatpush3.bf16.msra.mxu0 %v2069_v21 }
 0x12e   : > { %1894 = vmatprep.subr.bf16.mxu1 %v2070_v7  ;;  %1916 = vmatprep.subr.bf16.mxu0 %v2071_v8 }
 0x131   : > { %1895 = vmatpush3.bf16.msra.mxu1 %v2072_v10  ;;  %1917 = vmatpush3.bf16.msra.mxu0 %v2073_v11 }
 0x132   : > { %1896 = vmatprep.subr.bf16.mxu1 %v2074_v12  ;;  %1918 = vmatprep.subr.bf16.mxu0 %v2075_v26 }
 0x135   : > { %1897 = vmatpush3.bf16.msra.mxu1 %v2076_v13  ;;  %1919 = vmatpush3.bf16.msra.mxu0 %v2077_v15 }
 0x136   : > { %1898 = vmatprep.subr.bf16.mxu1 %v2078_v16  ;;  %1920 = vmatprep.subr.bf16.mxu0 %v2079_v17 }
 0x139   : > { %1899 = vmatpush3.bf16.msra.mxu1 %v2080_v44  ;;  %1921 = vmatpush3.bf16.msra.mxu0 %v2081_v18 }
 0x13a   : > { %1900 = vmatprep.subr.bf16.mxu1 %v2082_v19  ;;  %1922 = vmatprep.subr.bf16.mxu0 %v2083_v20 }
 0x13d   : > { %1901 = vmatpush3.bf16.msra.mxu1 %v2084_v25  ;;  %1923 = vmatpush3.bf16.msra.mxu0 %v2085_v27 }
 0x13e   : > { %1966 = vmatprep.subr.bf16.mxu1 %v2138_v31  ;;  %1986 = vmatprep.subr.mxu0 %v2138_v31 }
 0x140   : > { %1440 = vmatmul.mubr.bf16.vlgmr.msra.gmra.mxu1 %v706_v34  ;;  %1480 = vmatmul.mubr.bf16.vlgmr.msra.gmra.mxu0 %v724_v53 }
 0x141   : > { %1967 = vmatpush3.bf16.msra.mxu1 %v2086_v30  ;;  %1982 = vmatprep.mubr.msk.bf16.mxu1 %vm2139_vm4, %v2138_v31 }
 0x142   : > { %1968 = vmatprep.subr.bf16.mxu1 %v2138_v31  ;;  %1994 = vmatprep.mubr.msk.f32.mxu0 %vm2139_vm4, %v2138_v31 }
 0x143   : > { %1987 = vmatpush3.msra.mxu0 %v1546_v40 }
 0x144   : > { %1988 = vmatprep.subr.mxu0 %v2138_v31 }
 0x145   : > { %1969 = vmatpush3.bf16.msra.mxu1 %v2087_v35  ;;  %1989 = vmatpush3.msra.mxu0 %v1545_v41 }
 0x146   : > { %1970 = vmatprep.subr.bf16.mxu1 %v2138_v31  ;;  %1990 = vmatprep.subr.mxu0 %v2138_v31 }
 0x147   : > { %1991 = vmatpush3.msra.mxu0 %v1544_v42 }
 0x148   : > { %1992 = vmatprep.subr.mxu0 %v2138_v31 }
 0x149   : > { %1971 = vmatpush3.bf16.msra.mxu1 %v2088_v36  ;;  %1993 = vmatpush3.msra.mxu0 %v1543_v46 }
 0x14a   : > { %1972 = vmatprep.subr.bf16.mxu1 %v2138_v31 }
 0x14d   : > { %1973 = vmatpush3.bf16.msra.mxu1 %v2089_v45 }
 0x14e   : > { %1974 = vmatprep.subr.bf16.mxu1 %v2138_v31 }
 0x151   : > { %1975 = vmatpush3.bf16.msra.mxu1 %v2090_v37 }
 0x152   : > { %1976 = vmatprep.subr.bf16.mxu1 %v2138_v31 }
 0x155   : > { %1977 = vmatpush3.bf16.msra.mxu1 %v2091_v38 }
 0x156   : > { %1978 = vmatprep.subr.bf16.mxu1 %v2138_v31 }
 0x159   : > { %1979 = vmatpush3.bf16.msra.mxu1 %v2092_v39 }
 0x15a   : > { %1980 = vmatprep.subr.bf16.mxu1 %v2138_v31 }
 0x15d   : > { %1981 = vmatpush3.bf16.msra.mxu1 %v2093_v57 }
 0x160   : > { %1983 = vmatmul.mubr.bf16.vlgmr.msra.gmra.mxu1 %v2519_v14 }
 0x196   : > { %v1635_v31 = vpop.permute.xlu0 %1634 }
 0x1e0   : > { %v1858_v48 = vpop.f32.mrf.mxu1  ;;  %v1880_v49 = vpop.f32.mrf.mxu0 }
 0x1e2   : > { %v1859_v52 = vpop.f32.mrf.mxu1  ;;  %v1881_v60 = vpop.f32.mrf.mxu0 }
 0x1e3   : > { %v1860_v32 = vadd.f32 %v1859_v52, %v1858_v48  ;;  %v1882_v47 = vadd.f32 %v1881_v60, %v1880_v49 }
 0x1e4   : > { %v1861_v54 = vpop.f32.mrf.mxu1  ;;  %v1883_v55 = vpop.f32.mrf.mxu0 }
 0x1e5   : > { %v1362_v14 = vadd.f32 %v1860_v32, %v1752_v1 }
 0x1e6   : > { %v1862_v63 = vpop.f32.mrf.mxu1  ;;  %v1884_v2 = vpop.f32.mrf.mxu0 }
 0x1e7   : > { %v1402_v33 = vadd.f32 %v1882_v47, %v1362_v14 }
 0x200   : > { %v1902_v56 = vpop.f32.mrf.mxu1  ;;  %v1924_v58 = vpop.f32.mrf.mxu0 }
 0x202   : > { %v1903_v59 = vpop.f32.mrf.mxu1  ;;  %v1925_v6 = vpop.f32.mrf.mxu0 }
 0x203   : > { %v1904_v3 = vadd.f32 %v1903_v59, %v1902_v56  ;;  %v1926_v5 = vadd.f32 %v1925_v6, %v1924_v58 }
 0x204   : > { %v1905_v9 = vpop.f32.mrf.mxu1  ;;  %v1927_v61 = vpop.f32.mrf.mxu0 }
 0x205   : > { %v1442_v4 = vadd.f32 %v1904_v3, %v1402_v33 }
 0x206   : > { %v1906_v62 = vpop.f32.mrf.mxu1  ;;  %v1928_v0 = vpop.f32.mrf.mxu0 }
 0x207   : > { %v1482_v21 = vadd.f32 %v1926_v5, %v1442_v4 }
 0x220   : > { %v1521_v7 = vpop.f32.mrf.mxu1 }
 0x221   : > { %v1522_v8 = vadd.f32 %v1521_v7, %v1482_v21 }
 0x222   : > { %v1984_v10 = vpop.f32.mrf.mxu1 }
 0x223   : > { %v1527_v11 = vmin.f32 %v1522_v8, 0.0  ;;  %vm1532_vm5 = vcmp.gt.f32.partialorder %v1522_v8, 0.0 }
 0x224   : > { %v1524_v12 = vpop.f32.mrf.mxu1 }
 0x225   : > { %v1528_v26 = vmul.f32 1.442695, %v1527_v11 }
 0x226   : > { %v1985_v13 = vpop.f32.mrf.mxu1 }
 0x227   : > { %2126 = vpow2.f32 %v1528_v26 }
 0x234   : > { %v2127_v15 = vpop.eup %2126 }
 0x235   : > { %v1825_v16 = vadd.f32 -1.0, %v2127_v15 }
 0x237   : > { %v1531_v17 = vmul.f32 1.6732632, %v1825_v16 }
 0x239   : > { %v1533_v44 = vsel %vm1532_vm5, %v1522_v8, %v1531_v17 }
 0x23a   : > { %v1534_v18 = vmul.f32 1.050701, %v1533_v44 }
 0x23c   : > { %v1536_v19 = vrot.slane %v1534_v18, 1 }
 0x23e   : > { %v1538_v20 = vmax.f32 %v1534_v18, %v1536_v19 }
 0x240   : > { %v1540_v22 = vrot.slane %v1538_v20, 2 }
 0x242   : > { %v1542_v23 = vmax.f32 %v1538_v20, %v1540_v22 }
 0x244   : > { %1995 = vmatmul.mubr.msk.f32.vlgmr.msra.gmra.mxu0 %vm1548_vm6, %v1542_v23 }
 0x304   : > { %v1618_v25 = vpop.f32.mrf.mxu0 }
 0x305   : > { %v1619_v27 = vadd.f32 %v1618_v25, %v1547_v51 }
 0x306   : > { %v1996_v28 = vpop.f32.mrf.mxu0 }
 0x307   : > { %v1622_v29 = vmax.f32 %v1619_v27, -17.0 }
 0x309   : > { %v1623_v50 = vmin.f32 %v1622_v29, 10.0 }
 0x30b   : > { %v1624_v24 = vmul.f32 0.5, %v1623_v50 }
 0x30d   : > { %v1625_v30 = vmul.f32 1.442695, %v1624_v24 }
 0x30f   : > { %2128 = vpow2.f32 %v1625_v30 }
 0x31c   : > { %v2129_v34 = vpop.eup %2128 }
 0x31d   : > { %v1637_v53 = vmul.f32 %v2129_v34, %v1635_v31  ;;  %v1627_v45 = vmul.f32 %v2129_v34, %v2129_v34 }
 0x31f   : > { %1639 = vrot.lane.b32.xlu0 %v1637_v53, %s2141_s19  ;;  %v1648_v38 = vsel %vm1647_vm7, %v1619_v27, %v1627_v45 }
 0x391   : > { %v1640_v35 = vpop.permute.xlu0 %1639 }
 0x392   : > { %v1642_v36 = vadd.f32 %v1640_v35, %v1619_v27 }
 0x394   : > { %1644 = vrot.lane.b32.xlu1 %v1642_v36, %s2142_s20 }
 0x406   : > { %v1645_v37 = vpop.permute.xlu1 %1644 }
 0x407   : > { %v1650_v39 = vsel %vm1649_vm8, %v1648_v38, %v1645_v37 }
 0x408   : > { %1652 = vst.msk [vmem:[%s315_s23] sm:$0x1] %vm1651_vm9, %v1650_v39 }
 0x409 PF: > { %s18_s27 = sadd.s32 1, %s2136_s27  }
 0x40a   : > { %p15_p4 = scmp.ge.s32.totalorder %s18_s27, 4  }
 0x40c   :  { %17 = sbr.rel (!%p15_p4) target bundleno = 1 (0x1), region = 85 }

</bundles_post_ra>
